<compile_context>
chip_gen: v5e
topology: v5e:2x2
jax: 0.10.0
libtpu: 0.0.40
codegen_flags: <defaults>
</compile_context>

<pallas_src>
import numpy as np
import jax
import jax.numpy as jnp
from jax.experimental import pallas as pl
from jax.experimental.pallas import tpu as pltpu

# ---- small, module-consistent sizes ----
B, N = 2, 8
BN = B * N
INPUT_DIM, HIDDEN_DIM, LATENT_DIM, COND_DIM = 16, 32, 8, 2
N_ATOM_TYPES, N_VALENCE, N_BOND = 8, 4, 4

LANES = 128
NUM_W_BLOCKS = 5
NUM_B_ROWS = 8

# lane layout of the per-node data rows (rows 0:BN of the data slab)
EPS_OFF = INPUT_DIM                 # eps  lanes 16:24
COND_OFF = INPUT_DIM + LATENT_DIM   # cond lanes 24:26
# rows BN:2*BN of the data slab hold the block-diagonal adjacency at lanes 0:BN

# lane layout of intermediates / outputs (chosen so every output piece lands at
# its FINAL lane offset, no in-kernel lane shuffles needed):
MU_OFF = 0        # mu             lanes  0:8
LV_OFF = 8        # logvar         lanes  8:16
FEAT_OFF = 16     # decoded feats  lanes 16:32
TYPE_OFF = 32     # atom types     lanes 32:40
VAL_OFF = 40      # valences       lanes 40:44
CE_OFF = 44       # cond_enc       lanes 44:76
D1_OFF = 8        # decoder h1     lanes  8:40
AT1_OFF = 64      # atom-head h    lanes 64:96
RE1_OFF = 96      # rule-head h    lanes 96:128
OUT_USED = CE_OFF + HIDDEN_DIM      # 76 real lanes in the output slab


# ----------------------------- Pallas kernel --------------------------------
def mgcvae_kernel(data_ref, w_ref, b_ref, out_ref):
    f32, bf16 = jnp.float32, jnp.bfloat16

    nd = data_ref[0:BN, :]                      # (BN,128)  x | eps | cond
    adj = data_ref[BN:2 * BN, 0:BN]             # (BN,BN)   block-diag adjacency

    lane = jax.lax.broadcasted_iota(jnp.int32, (BN, LANES), 1)
    lane8, lane16 = lane < LV_OFF, lane < FEAT_OFF
    lane32, lane44 = lane < TYPE_OFF, lane < CE_OFF

    def W(i):                                   # i-th 128x128 bf16 block
        return w_ref[i * LANES:(i + 1) * LANES, :]

    def bias(r):                                # (1,128) f32 bias row
        return b_ref[r:r + 1, :]

    def wdot(act, i):                           # bf16 MXU dot, f32 accumulate
        return jnp.dot(act.astype(bf16), W(i), preferred_element_type=f32)

    def adot(t):                                # graph-conv adjacency apply
        return jnp.dot(adj, t, preferred_element_type=f32)

    relu = lambda v: jnp.maximum(v, 0.0)
    sigm = lambda v: 1.0 / (1.0 + jnp.exp(-v))

    # ---- stage 1: gc1 (graph conv) fused with cond-encoder layer 1 ---------
    t1 = wdot(nd, 0)                            # gc1 pre @0:32, ce1 pre @32:64
    u1 = relu(jnp.where(lane32, adot(t1), t1) + bias(0))

    # ---- stage 2: gc2 fused with cond-encoder layer 2 -----------------------
    t2 = wdot(u1, 1)                            # gc2 pre @0:32, ce2 pre @44:76
    v2 = jnp.where(lane32, adot(t2), t2) + bias(1)
    u2 = jnp.where(lane32, relu(v2), v2)        # h2 @0:32, cond_enc @44:76

    # ---- stage 3: gc3_mu | gc3_logvar in one dot (block shared w/ at2|re2) --
    mulv = adot(wdot(u2, 2)) + bias(2)          # mu @0:8, logvar @8:16

    # ---- reparameterize (training path; eps supplied via the data slab) ----
    mu = mulv[:, MU_OFF:MU_OFF + LATENT_DIM]
    lv = mulv[:, LV_OFF:LV_OFF + LATENT_DIM]
    eps = nd[:, EPS_OFF:EPS_OFF + LATENT_DIM]
    z = mu + eps * jnp.exp(0.5 * lv)
    z128 = jnp.concatenate(
        [z, jnp.zeros((BN, LANES - LATENT_DIM), f32)], axis=-1)

    # ---- decoder (d1 is ONE merged dot over [z @0:8 | cond_enc @44:76]) -----
    d_in = jnp.where(lane8, z128, u2)
    d1 = relu(wdot(d_in, 3) + bias(3))          # @ 8:40   (block 3, shared)
    d2 = relu(wdot(d1, 4) + bias(4))            # @ 44:76  (block 4, shared)
    feats = sigm(wdot(d2, 4) + bias(5))         # @ 16:32  (block 4, shared)

    # ---- atom-type / rule heads (fused; reuse shared blocks 3 and 2) --------
    tr = relu(wdot(feats, 3) + bias(6))         # at1 @64:96, re1 @96:128
    hr = wdot(tr, 2) + bias(7)                  # atom logits @32:40, rule @40:44

    # masked in-place softmax over the atom-type lanes (exact division)
    mask_t = (lane >= TYPE_OFF) & (lane < TYPE_OFF + N_ATOM_TYPES)
    m = jnp.max(jnp.where(mask_t, hr, -jnp.inf), axis=-1, keepdims=True)
    e = jnp.where(mask_t, jnp.exp(jnp.minimum(hr - m, 0.0)), 0.0)
    types = e / jnp.sum(e, axis=-1, keepdims=True)

    mask_v = (lane >= VAL_OFF) & (lane < VAL_OFF + N_VALENCE)
    val = jnp.where(mask_v, sigm(hr) * 4.0, 0.0)

    # ---- compose the packed output slab (every piece already lane-aligned) --
    # [ mu(8) | logvar(8) | combined_feats(16) | types(8) | val(4) | ce(32) | 0 ]
    out_ref[...] = jnp.where(
        lane16, mulv,
        jnp.where(lane32, feats * 0.125,        # mean(softmax) == 1/8 exactly
                  jnp.where(lane44, types + val, u2)))


# --------------------------- parameter setup ---------------------------------
def init_linear(key, fan_in, fan_out):
    kw, kb = jax.random.split(key)
    bound = 1.0 / np.sqrt(fan_in)
    w = jax.random.uniform(kw, (fan_out, fan_in), jnp.float32, -bound, bound)
    b = jax.random.uniform(kb, (fan_out,), jnp.float32, -bound, bound)
    return w, b


def init_params(key):
    ks = jax.random.split(key, 16)
    p = {}
    p["gc1"] = init_linear(ks[0], INPUT_DIM, HIDDEN_DIM)
    p["gc2"] = init_linear(ks[1], HIDDEN_DIM, HIDDEN_DIM)
    p["gc3_mu"] = init_linear(ks[2], HIDDEN_DIM, LATENT_DIM)
    p["gc3_lv"] = init_linear(ks[3], HIDDEN_DIM, LATENT_DIM)
    p["ce1"] = init_linear(ks[4], COND_DIM, HIDDEN_DIM)
    p["ce2"] = init_linear(ks[5], HIDDEN_DIM, HIDDEN_DIM)
    p["d1"] = init_linear(ks[6], LATENT_DIM + HIDDEN_DIM, HIDDEN_DIM)
    p["d2"] = init_linear(ks[7], HIDDEN_DIM, HIDDEN_DIM)
    p["d3"] = init_linear(ks[8], HIDDEN_DIM, INPUT_DIM)
    p["at1"] = init_linear(ks[9], INPUT_DIM, HIDDEN_DIM)
    p["at2"] = init_linear(ks[10], HIDDEN_DIM, N_ATOM_TYPES)
    p["re1"] = init_linear(ks[11], INPUT_DIM, HIDDEN_DIM)
    p["re2"] = init_linear(ks[12], HIDDEN_DIM, N_VALENCE)
    p["bp1"] = init_linear(ks[13], INPUT_DIM * 2 + HIDDEN_DIM, HIDDEN_DIM)
    p["bp2"] = init_linear(ks[14], HIDDEN_DIM, HIDDEN_DIM)
    p["bp3"] = init_linear(ks[15], HIDDEN_DIM, N_BOND)
    return p


def pack_params(params):
    """Pack all weights into 5 zero-padded 128x128 blocks (bf16, pre-transposed
    to (in, out) with staircase row/column placement) and all biases into one
    (8, 128) f32 slab.  Zero rows/columns kill every junk lane by construction."""
    def wT(name):
        return np.asarray(params[name][0], np.float32).T   # (in, out)

    def bv(name):
        return np.asarray(params[name][1], np.float32)

    blk = np.zeros((NUM_W_BLOCKS, LANES, LANES), np.float32)

    # block 0 (stage 1):  gc1 rows 0:16 -> cols 0:32 ; ce1 rows 24:26 -> cols 32:64
    blk[0, 0:INPUT_DIM, 0:HIDDEN_DIM] = wT("gc1")
    blk[0, COND_OFF:COND_OFF + COND_DIM, HIDDEN_DIM:2 * HIDDEN_DIM] = wT("ce1")

    # block 1 (stage 2):  gc2 rows 0:32 -> cols 0:32 ; ce2 rows 32:64 -> cols 44:76
    blk[1, 0:HIDDEN_DIM, 0:HIDDEN_DIM] = wT("gc2")
    blk[1, HIDDEN_DIM:2 * HIDDEN_DIM, CE_OFF:CE_OFF + HIDDEN_DIM] = wT("ce2")

    # block 2 (stage 3 + head 2):  gc3_mu|logvar rows 0:32 -> cols 0:16 ;
    #                              at2 rows 64:96 -> cols 32:40 ; re2 rows 96:128 -> cols 40:44
    blk[2, 0:HIDDEN_DIM, MU_OFF:MU_OFF + LATENT_DIM] = wT("gc3_mu")
    blk[2, 0:HIDDEN_DIM, LV_OFF:LV_OFF + LATENT_DIM] = wT("gc3_lv")
    blk[2, AT1_OFF:AT1_OFF + HIDDEN_DIM, TYPE_OFF:TYPE_OFF + N_ATOM_TYPES] = wT("at2")
    blk[2, RE1_OFF:RE1_OFF + HIDDEN_DIM, VAL_OFF:VAL_OFF + N_VALENCE] = wT("re2")

    # block 3 (decoder d1 + head 1):  d1 z-rows 0:8 & cond-rows 44:76 -> cols 8:40 ;
    #                                 at1 rows 16:32 -> cols 64:96 ; re1 rows 16:32 -> cols 96:128
    wd1 = wT("d1")                                         # (40, 32)
    blk[3, 0:LATENT_DIM, D1_OFF:D1_OFF + HIDDEN_DIM] = wd1[:LATENT_DIM]
    blk[3, CE_OFF:CE_OFF + HIDDEN_DIM, D1_OFF:D1_OFF + HIDDEN_DIM] = wd1[LATENT_DIM:]
    blk[3, FEAT_OFF:FEAT_OFF + INPUT_DIM, AT1_OFF:AT1_OFF + HIDDEN_DIM] = wT("at1")
    blk[3, FEAT_OFF:FEAT_OFF + INPUT_DIM, RE1_OFF:RE1_OFF + HIDDEN_DIM] = wT("re1")

    # block 4 (decoder d2 + d3):  d2 rows 8:40 -> cols 44:76 ; d3 rows 44:76 -> cols 16:32
    blk[4, D1_OFF:D1_OFF + HIDDEN_DIM, CE_OFF:CE_OFF + HIDDEN_DIM] = wT("d2")
    blk[4, CE_OFF:CE_OFF + HIDDEN_DIM, FEAT_OFF:FEAT_OFF + INPUT_DIM] = wT("d3")

    w_slab = jnp.asarray(blk.reshape(NUM_W_BLOCKS * LANES, LANES),
                         dtype=jnp.bfloat16)

    bias = np.zeros((NUM_B_ROWS, LANES), np.float32)
    bias[0, 0:HIDDEN_DIM] = bv("gc1")
    bias[0, HIDDEN_DIM:2 * HIDDEN_DIM] = bv("ce1")
    bias[1, 0:HIDDEN_DIM] = bv("gc2")
    bias[1, CE_OFF:CE_OFF + HIDDEN_DIM] = bv("ce2")
    bias[2, MU_OFF:MU_OFF + LATENT_DIM] = bv("gc3_mu")
    bias[2, LV_OFF:LV_OFF + LATENT_DIM] = bv("gc3_lv")
    bias[3, D1_OFF:D1_OFF + HIDDEN_DIM] = bv("d1")
    bias[4, CE_OFF:CE_OFF + HIDDEN_DIM] = bv("d2")
    bias[5, FEAT_OFF:FEAT_OFF + INPUT_DIM] = bv("d3")
    bias[6, AT1_OFF:AT1_OFF + HIDDEN_DIM] = bv("at1")
    bias[6, RE1_OFF:RE1_OFF + HIDDEN_DIM] = bv("re1")
    bias[7, TYPE_OFF:TYPE_OFF + N_ATOM_TYPES] = bv("at2")
    bias[7, VAL_OFF:VAL_OFF + N_VALENCE] = bv("re2")
    return w_slab, jnp.asarray(bias)


# ------------------------------ wrapper --------------------------------------
def _pack_data(x, adj, condition, eps):
    """One lane-dense (2*BN, 128) slab: rows 0:BN = x|eps|cond per node,
    rows BN:2BN = block-diagonal adjacency at lanes 0:BN."""
    xf = x.reshape(BN, INPUT_DIM)
    ef = eps.reshape(BN, LATENT_DIM)
    cf = jnp.repeat(condition, N, axis=0)
    top = jnp.concatenate(
        [xf, ef, cf,
         jnp.zeros((BN, LANES - COND_OFF - COND_DIM), jnp.float32)], axis=-1)
    # block-diagonal (BN, BN) adjacency in one fused expression
    adj_bd = jnp.reshape(
        jnp.transpose(jnp.eye(B, dtype=jnp.float32)[:, :, None, None] *
                      adj[:, None, :, :], (0, 2, 1, 3)), (BN, BN))
    bot = jnp.concatenate(
        [adj_bd, jnp.zeros((BN, LANES - BN), jnp.float32)], axis=-1)
    return jnp.concatenate([top, bot], axis=0)


@jax.jit
def mgcvae_forward_dense(x, adj, condition, eps, w_slab, b_slab):
    data = _pack_data(x, adj, condition, eps)

    packed = pl.pallas_call(
        mgcvae_kernel,
        out_shape=jax.ShapeDtypeStruct((BN, LANES), jnp.float32),
        in_specs=[pl.BlockSpec(memory_space=pltpu.MemorySpace.VMEM)] * 3,
        out_specs=pl.BlockSpec(memory_space=pltpu.MemorySpace.VMEM),
    )(data, w_slab, b_slab)

    mu = packed[:, MU_OFF:MU_OFF + LATENT_DIM].reshape(B, N, LATENT_DIM)
    logvar = packed[:, LV_OFF:LV_OFF + LATENT_DIM].reshape(B, N, LATENT_DIM)
    atom_feats = packed[:, FEAT_OFF:FEAT_OFF + INPUT_DIM].reshape(B, N, INPUT_DIM)
    atom_types = packed[:, TYPE_OFF:TYPE_OFF + N_ATOM_TYPES].reshape(B, N, N_ATOM_TYPES)
    valences = packed[:, VAL_OFF:VAL_OFF + N_VALENCE].reshape(B, N, N_VALENCE)
    cond_enc = packed[:, CE_OFF:CE_OFF + HIDDEN_DIM].reshape(B, N, HIDDEN_DIM)[:, 0:1, :]
    return mu, logvar, atom_feats, atom_types, valences, cond_enc


# ------------------ host-side greedy bond construction -----------------------
# TODO(synk): the bond loop has data-dependent control flow and returns a
# Python list of tuples; it is executed on the host (NumPy), not in Pallas.
def bond_construction(atom_features, atom_types, valences, cond_enc, params):
    w1, b1 = (np.asarray(a) for a in params["bp1"])
    w2, b2 = (np.asarray(a) for a in params["bp2"])
    w3, b3 = (np.asarray(a) for a in params["bp3"])

    def bond_mlp(v):
        h = np.maximum(v @ w1.T + b1, 0.0)
        h = np.maximum(h @ w2.T + b2, 0.0)
        logits = h @ w3.T + b3
        e = np.exp(logits - logits.max())
        return e / e.sum()

    all_bonds = []
    for i in range(atom_features.shape[0]):
        bonds = []
        current = np.array(valences[i], copy=True)
        type_scores = atom_types[i].max(axis=1)
        order = np.argsort(-type_scores, kind="stable")
        for idx1 in order:
            if current[idx1].sum() < 0.1:
                continue
            for idx2 in order:
                if idx1 >= idx2 or current[idx2].sum() < 0.1:
                    continue
                combined = np.concatenate(
                    [atom_features[i, idx1], atom_features[i, idx2], cond_enc[i, 0]])
                bond_type = int(np.argmax(bond_mlp(combined)))
                if bond_type > 0:
                    req = bond_type
                    if current[idx1][req - 1] > 0 and current[idx2][req - 1] > 0:
                        bonds.append((int(idx1), int(idx2), bond_type))
                        current[idx1] -= req
                        current[idx2] -= req
        all_bonds.append(bonds)
    return all_bonds


def mgcvae_forward(x, adj, condition, eps, params, w_slab, b_slab):
    mu, logvar, atom_feats, atom_types, valences, cond_enc = mgcvae_forward_dense(
        x, adj, condition, eps, w_slab, b_slab)
    jax.block_until_ready(atom_feats)
    bonds = bond_construction(np.asarray(atom_feats), np.asarray(atom_types),
                              np.asarray(valences), np.asarray(cond_enc), params)
    return (atom_feats, bonds), mu, logvar


# --------------------------------- main ---------------------------------------
if __name__ == "__main__":
    key = jax.random.PRNGKey(0)
    kp, kx, ka, kc, ke = jax.random.split(key, 5)

    params = init_params(kp)
    w_slab, b_slab = pack_params(params)

    x = jax.random.normal(kx, (B, N, INPUT_DIM), jnp.float32)
    a = jax.random.uniform(ka, (B, N, N), jnp.float32)
    adj = ((a + jnp.swapaxes(a, 1, 2)) * 0.5 > 0.5).astype(jnp.float32)
    condition = jax.random.normal(kc, (B, COND_DIM), jnp.float32)
    eps = jax.random.normal(ke, (B, N, LATENT_DIM), jnp.float32)  # reparam noise

    (atom_features, bond_features), mu, logvar = mgcvae_forward(
        x, adj, condition, eps, params, w_slab, b_slab)
    jax.block_until_ready((atom_features, mu, logvar))

    assert atom_features.shape == (B, N, INPUT_DIM)
    assert mu.shape == (B, N, LATENT_DIM) and logvar.shape == (B, N, LATENT_DIM)
    assert len(bond_features) == B
    assert bool(jnp.all(jnp.isfinite(atom_features)))
    assert bool(jnp.all(jnp.isfinite(mu))) and bool(jnp.all(jnp.isfinite(logvar)))
    print("KERNEL_OK")
</pallas_src>

<mosaic_0001>
module attributes {stable_mosaic.version = 11 : i64} {
  func.func @mgcvae_kernel(%arg0: memref<32x128xf32, #tpu.memory_space<vmem>>, %arg1: memref<640x128xbf16, #tpu.memory_space<vmem>>, %arg2: memref<8x128xf32, #tpu.memory_space<vmem>>, %arg3: memref<16x128xf32, #tpu.memory_space<vmem>>) attributes {dimension_semantics = [], scalar_prefetch = 0 : i64, scratch_operands = 0 : i64, tpu.core_type = #tpu.core_type<tc>} {
    %c0 = arith.constant 0 : index
    %c0_0 = arith.constant 0 : index
    %0 = vector.load %arg0[%c0, %c0_0] : memref<32x128xf32, #tpu.memory_space<vmem>>, vector<16x128xf32>
    %c16 = arith.constant 16 : index
    %c0_1 = arith.constant 0 : index
    %1 = vector.load %arg0[%c16, %c0_1] : memref<32x128xf32, #tpu.memory_space<vmem>>, vector<16x16xf32>
    %2 = tpu.iota {dimensions = array<i32: 1>} : vector<16x128xi32>
    %c8_i32 = arith.constant 8 : i32
    %3 = vector.broadcast %c8_i32 : i32 to vector<16x128xi32>
    %4 = arith.cmpi slt, %2, %3 : vector<16x128xi32>
    %c16_i32 = arith.constant 16 : i32
    %5 = vector.broadcast %c16_i32 : i32 to vector<16x128xi32>
    %6 = arith.cmpi slt, %2, %5 : vector<16x128xi32>
    %c32_i32 = arith.constant 32 : i32
    %7 = vector.broadcast %c32_i32 : i32 to vector<16x128xi32>
    %8 = arith.cmpi slt, %2, %7 : vector<16x128xi32>
    %c44_i32 = arith.constant 44 : i32
    %9 = vector.broadcast %c44_i32 : i32 to vector<16x128xi32>
    %10 = arith.cmpi slt, %2, %9 : vector<16x128xi32>
    %11 = arith.truncf %0 : vector<16x128xf32> to vector<16x128xbf16>
    %c0_2 = arith.constant 0 : index
    %c0_3 = arith.constant 0 : index
    %12 = vector.load %arg1[%c0_2, %c0_3] : memref<640x128xbf16, #tpu.memory_space<vmem>>, vector<128x128xbf16>
    %cst = arith.constant dense<0.000000e+00> : vector<16x128xf32>
    %13 = tpu.matmul %11, %12, %cst {dimension_numbers = #tpu.dot_dimension_numbers<[1], [0], [0], [1], [0, 0, 1, 1], [], []>} : vector<16x128xbf16>, vector<128x128xbf16>, vector<16x128xf32> -> vector<16x128xf32>
    %cst_4 = arith.constant dense<0.000000e+00> : vector<16x128xf32>
    %14 = tpu.matmul %1, %13, %cst_4 {dimension_numbers = #tpu.dot_dimension_numbers<[1], [0], [0], [1], [0, 0, 1, 1], [], []>} : vector<16x16xf32>, vector<16x128xf32>, vector<16x128xf32> -> vector<16x128xf32>
    %15 = arith.select %8, %14, %13 : vector<16x128xi1>, vector<16x128xf32>
    %c0_5 = arith.constant 0 : index
    %c0_6 = arith.constant 0 : index
    %16 = vector.load %arg2[%c0_5, %c0_6] : memref<8x128xf32, #tpu.memory_space<vmem>>, vector<1x128xf32>
    %17 = vector.broadcast %16 : vector<1x128xf32> to vector<16x128xf32>
    %18 = arith.addf %15, %17 : vector<16x128xf32>
    %cst_7 = arith.constant 0.000000e+00 : f32
    %19 = vector.broadcast %cst_7 : f32 to vector<16x128xf32>
    %20 = arith.maximumf %18, %19 : vector<16x128xf32>
    %21 = arith.truncf %20 : vector<16x128xf32> to vector<16x128xbf16>
    %c128 = arith.constant 128 : index
    %c0_8 = arith.constant 0 : index
    %22 = vector.load %arg1[%c128, %c0_8] : memref<640x128xbf16, #tpu.memory_space<vmem>>, vector<128x128xbf16>
    %cst_9 = arith.constant dense<0.000000e+00> : vector<16x128xf32>
    %23 = tpu.matmul %21, %22, %cst_9 {dimension_numbers = #tpu.dot_dimension_numbers<[1], [0], [0], [1], [0, 0, 1, 1], [], []>} : vector<16x128xbf16>, vector<128x128xbf16>, vector<16x128xf32> -> vector<16x128xf32>
    %cst_10 = arith.constant dense<0.000000e+00> : vector<16x128xf32>
    %24 = tpu.matmul %1, %23, %cst_10 {dimension_numbers = #tpu.dot_dimension_numbers<[1], [0], [0], [1], [0, 0, 1, 1], [], []>} : vector<16x16xf32>, vector<16x128xf32>, vector<16x128xf32> -> vector<16x128xf32>
    %25 = arith.select %8, %24, %23 : vector<16x128xi1>, vector<16x128xf32>
    %c1 = arith.constant 1 : index
    %c0_11 = arith.constant 0 : index
    %26 = vector.load %arg2[%c1, %c0_11] : memref<8x128xf32, #tpu.memory_space<vmem>>, vector<1x128xf32>
    %27 = vector.broadcast %26 : vector<1x128xf32> to vector<16x128xf32>
    %28 = arith.addf %25, %27 : vector<16x128xf32>
    %cst_12 = arith.constant 0.000000e+00 : f32
    %29 = vector.broadcast %cst_12 : f32 to vector<16x128xf32>
    %30 = arith.maximumf %28, %29 : vector<16x128xf32>
    %31 = arith.select %8, %30, %28 : vector<16x128xi1>, vector<16x128xf32>
    %32 = arith.truncf %31 : vector<16x128xf32> to vector<16x128xbf16>
    %c256 = arith.constant 256 : index
    %c0_13 = arith.constant 0 : index
    %33 = vector.load %arg1[%c256, %c0_13] : memref<640x128xbf16, #tpu.memory_space<vmem>>, vector<128x128xbf16>
    %cst_14 = arith.constant dense<0.000000e+00> : vector<16x128xf32>
    %34 = tpu.matmul %32, %33, %cst_14 {dimension_numbers = #tpu.dot_dimension_numbers<[1], [0], [0], [1], [0, 0, 1, 1], [], []>} : vector<16x128xbf16>, vector<128x128xbf16>, vector<16x128xf32> -> vector<16x128xf32>
    %cst_15 = arith.constant dense<0.000000e+00> : vector<16x128xf32>
    %35 = tpu.matmul %1, %34, %cst_15 {dimension_numbers = #tpu.dot_dimension_numbers<[1], [0], [0], [1], [0, 0, 1, 1], [], []>} : vector<16x16xf32>, vector<16x128xf32>, vector<16x128xf32> -> vector<16x128xf32>
    %c2 = arith.constant 2 : index
    %c0_16 = arith.constant 0 : index
    %36 = vector.load %arg2[%c2, %c0_16] : memref<8x128xf32, #tpu.memory_space<vmem>>, vector<1x128xf32>
    %37 = vector.broadcast %36 : vector<1x128xf32> to vector<16x128xf32>
    %38 = arith.addf %35, %37 : vector<16x128xf32>
    %39 = vector.extract_strided_slice %38 {offsets = [0, 0], sizes = [16, 8], strides = [1, 1]} : vector<16x128xf32> to vector<16x8xf32>
    %40 = vector.extract_strided_slice %38 {offsets = [0, 8], sizes = [16, 8], strides = [1, 1]} : vector<16x128xf32> to vector<16x8xf32>
    %41 = vector.extract_strided_slice %0 {offsets = [0, 16], sizes = [16, 8], strides = [1, 1]} : vector<16x128xf32> to vector<16x8xf32>
    %cst_17 = arith.constant 5.000000e-01 : f32
    %42 = vector.broadcast %cst_17 : f32 to vector<16x8xf32>
    %43 = arith.mulf %42, %40 : vector<16x8xf32>
    %44 = math.exp %43 : vector<16x8xf32>
    %45 = arith.mulf %41, %44 : vector<16x8xf32>
    %46 = arith.addf %39, %45 : vector<16x8xf32>
    %cst_18 = arith.constant 0.000000e+00 : f32
    %47 = vector.broadcast %cst_18 : f32 to vector<16x120xf32>
    %48 = tpu.concatenate %46, %47 in 1 : vector<16x8xf32>, vector<16x120xf32> -> vector<16x128xf32>
    %49 = arith.select %4, %48, %31 : vector<16x128xi1>, vector<16x128xf32>
    %50 = arith.truncf %49 : vector<16x128xf32> to vector<16x128xbf16>
    %c384 = arith.constant 384 : index
    %c0_19 = arith.constant 0 : index
    %51 = vector.load %arg1[%c384, %c0_19] : memref<640x128xbf16, #tpu.memory_space<vmem>>, vector<128x128xbf16>
    %cst_20 = arith.constant dense<0.000000e+00> : vector<16x128xf32>
    %52 = tpu.matmul %50, %51, %cst_20 {dimension_numbers = #tpu.dot_dimension_numbers<[1], [0], [0], [1], [0, 0, 1, 1], [], []>} : vector<16x128xbf16>, vector<128x128xbf16>, vector<16x128xf32> -> vector<16x128xf32>
    %c3 = arith.constant 3 : index
    %c0_21 = arith.constant 0 : index
    %53 = vector.load %arg2[%c3, %c0_21] : memref<8x128xf32, #tpu.memory_space<vmem>>, vector<1x128xf32>
    %54 = vector.broadcast %53 : vector<1x128xf32> to vector<16x128xf32>
    %55 = arith.addf %52, %54 : vector<16x128xf32>
    %cst_22 = arith.constant 0.000000e+00 : f32
    %56 = vector.broadcast %cst_22 : f32 to vector<16x128xf32>
    %57 = arith.maximumf %55, %56 : vector<16x128xf32>
    %58 = arith.truncf %57 : vector<16x128xf32> to vector<16x128xbf16>
    %c512 = arith.constant 512 : index
    %c0_23 = arith.constant 0 : index
    %59 = vector.load %arg1[%c512, %c0_23] : memref<640x128xbf16, #tpu.memory_space<vmem>>, vector<128x128xbf16>
    %cst_24 = arith.constant dense<0.000000e+00> : vector<16x128xf32>
    %60 = tpu.matmul %58, %59, %cst_24 {dimension_numbers = #tpu.dot_dimension_numbers<[1], [0], [0], [1], [0, 0, 1, 1], [], []>} : vector<16x128xbf16>, vector<128x128xbf16>, vector<16x128xf32> -> vector<16x128xf32>
    %c4 = arith.constant 4 : index
    %c0_25 = arith.constant 0 : index
    %61 = vector.load %arg2[%c4, %c0_25] : memref<8x128xf32, #tpu.memory_space<vmem>>, vector<1x128xf32>
    %62 = vector.broadcast %61 : vector<1x128xf32> to vector<16x128xf32>
    %63 = arith.addf %60, %62 : vector<16x128xf32>
    %cst_26 = arith.constant 0.000000e+00 : f32
    %64 = vector.broadcast %cst_26 : f32 to vector<16x128xf32>
    %65 = arith.maximumf %63, %64 : vector<16x128xf32>
    %66 = arith.truncf %65 : vector<16x128xf32> to vector<16x128xbf16>
    %c512_27 = arith.constant 512 : index
    %c0_28 = arith.constant 0 : index
    %67 = vector.load %arg1[%c512_27, %c0_28] : memref<640x128xbf16, #tpu.memory_space<vmem>>, vector<128x128xbf16>
    %cst_29 = arith.constant dense<0.000000e+00> : vector<16x128xf32>
    %68 = tpu.matmul %66, %67, %cst_29 {dimension_numbers = #tpu.dot_dimension_numbers<[1], [0], [0], [1], [0, 0, 1, 1], [], []>} : vector<16x128xbf16>, vector<128x128xbf16>, vector<16x128xf32> -> vector<16x128xf32>
    %c5 = arith.constant 5 : index
    %c0_30 = arith.constant 0 : index
    %69 = vector.load %arg2[%c5, %c0_30] : memref<8x128xf32, #tpu.memory_space<vmem>>, vector<1x128xf32>
    %70 = vector.broadcast %69 : vector<1x128xf32> to vector<16x128xf32>
    %71 = arith.addf %68, %70 : vector<16x128xf32>
    %cst_31 = arith.constant 0.000000e+00 : f32
    %72 = vector.broadcast %cst_31 : f32 to vector<16x128xf32>
    %73 = arith.subf %72, %71 : vector<16x128xf32>
    %74 = math.exp %73 : vector<16x128xf32>
    %cst_32 = arith.constant 1.000000e+00 : f32
    %75 = vector.broadcast %cst_32 : f32 to vector<16x128xf32>
    %76 = arith.addf %75, %74 : vector<16x128xf32>
    %cst_33 = arith.constant 1.000000e+00 : f32
    %77 = vector.broadcast %cst_33 : f32 to vector<16x128xf32>
    %78 = arith.divf %77, %76 : vector<16x128xf32>
    %79 = arith.truncf %78 : vector<16x128xf32> to vector<16x128xbf16>
    %c384_34 = arith.constant 384 : index
    %c0_35 = arith.constant 0 : index
    %80 = vector.load %arg1[%c384_34, %c0_35] : memref<640x128xbf16, #tpu.memory_space<vmem>>, vector<128x128xbf16>
    %cst_36 = arith.constant dense<0.000000e+00> : vector<16x128xf32>
    %81 = tpu.matmul %79, %80, %cst_36 {dimension_numbers = #tpu.dot_dimension_numbers<[1], [0], [0], [1], [0, 0, 1, 1], [], []>} : vector<16x128xbf16>, vector<128x128xbf16>, vector<16x128xf32> -> vector<16x128xf32>
    %c6 = arith.constant 6 : index
    %c0_37 = arith.constant 0 : index
    %82 = vector.load %arg2[%c6, %c0_37] : memref<8x128xf32, #tpu.memory_space<vmem>>, vector<1x128xf32>
    %83 = vector.broadcast %82 : vector<1x128xf32> to vector<16x128xf32>
    %84 = arith.addf %81, %83 : vector<16x128xf32>
    %cst_38 = arith.constant 0.000000e+00 : f32
    %85 = vector.broadcast %cst_38 : f32 to vector<16x128xf32>
    %86 = arith.maximumf %84, %85 : vector<16x128xf32>
    %87 = arith.truncf %86 : vector<16x128xf32> to vector<16x128xbf16>
    %c256_39 = arith.constant 256 : index
    %c0_40 = arith.constant 0 : index
    %88 = vector.load %arg1[%c256_39, %c0_40] : memref<640x128xbf16, #tpu.memory_space<vmem>>, vector<128x128xbf16>
    %cst_41 = arith.constant dense<0.000000e+00> : vector<16x128xf32>
    %89 = tpu.matmul %87, %88, %cst_41 {dimension_numbers = #tpu.dot_dimension_numbers<[1], [0], [0], [1], [0, 0, 1, 1], [], []>} : vector<16x128xbf16>, vector<128x128xbf16>, vector<16x128xf32> -> vector<16x128xf32>
    %c7 = arith.constant 7 : index
    %c0_42 = arith.constant 0 : index
    %90 = vector.load %arg2[%c7, %c0_42] : memref<8x128xf32, #tpu.memory_space<vmem>>, vector<1x128xf32>
    %91 = vector.broadcast %90 : vector<1x128xf32> to vector<16x128xf32>
    %92 = arith.addf %89, %91 : vector<16x128xf32>
    %c32_i32_43 = arith.constant 32 : i32
    %93 = vector.broadcast %c32_i32_43 : i32 to vector<16x128xi32>
    %94 = arith.cmpi sge, %2, %93 : vector<16x128xi32>
    %c40_i32 = arith.constant 40 : i32
    %95 = vector.broadcast %c40_i32 : i32 to vector<16x128xi32>
    %96 = arith.cmpi slt, %2, %95 : vector<16x128xi32>
    %97 = arith.andi %94, %96 : vector<16x128xi1>
    %cst_44 = arith.constant 0xFF800000 : f32
    %98 = vector.broadcast %cst_44 : f32 to vector<16x128xf32>
    %99 = arith.select %97, %92, %98 : vector<16x128xi1>, vector<16x128xf32>
    %cst_45 = arith.constant dense<0xFF800000> : vector<16xf32>
    %100 = vector.multi_reduction <maximumf>, %99, %cst_45 [1] : vector<16x128xf32> to vector<16xf32>
    %101 = vector.shape_cast %100 : vector<16xf32> to vector<16x1xf32>
    %102 = vector.broadcast %101 : vector<16x1xf32> to vector<16x128xf32>
    %103 = arith.subf %92, %102 : vector<16x128xf32>
    %cst_46 = arith.constant 0.000000e+00 : f32
    %104 = vector.broadcast %cst_46 : f32 to vector<16x128xf32>
    %105 = arith.minimumf %103, %104 : vector<16x128xf32>
    %106 = math.exp %105 : vector<16x128xf32>
    %cst_47 = arith.constant 0.000000e+00 : f32
    %107 = vector.broadcast %cst_47 : f32 to vector<16x128xf32>
    %108 = arith.select %97, %106, %107 : vector<16x128xi1>, vector<16x128xf32>
    %cst_48 = arith.constant dense<0.000000e+00> : vector<16xf32>
    %109 = vector.multi_reduction <add>, %108, %cst_48 [1] : vector<16x128xf32> to vector<16xf32>
    %110 = vector.shape_cast %109 : vector<16xf32> to vector<16x1xf32>
    %111 = vector.broadcast %110 : vector<16x1xf32> to vector<16x128xf32>
    %112 = arith.divf %108, %111 : vector<16x128xf32>
    %c40_i32_49 = arith.constant 40 : i32
    %113 = vector.broadcast %c40_i32_49 : i32 to vector<16x128xi32>
    %114 = arith.cmpi sge, %2, %113 : vector<16x128xi32>
    %c44_i32_50 = arith.constant 44 : i32
    %115 = vector.broadcast %c44_i32_50 : i32 to vector<16x128xi32>
    %116 = arith.cmpi slt, %2, %115 : vector<16x128xi32>
    %117 = arith.andi %114, %116 : vector<16x128xi1>
    %cst_51 = arith.constant 0.000000e+00 : f32
    %118 = vector.broadcast %cst_51 : f32 to vector<16x128xf32>
    %119 = arith.subf %118, %92 : vector<16x128xf32>
    %120 = math.exp %119 : vector<16x128xf32>
    %cst_52 = arith.constant 1.000000e+00 : f32
    %121 = vector.broadcast %cst_52 : f32 to vector<16x128xf32>
    %122 = arith.addf %121, %120 : vector<16x128xf32>
    %cst_53 = arith.constant 1.000000e+00 : f32
    %123 = vector.broadcast %cst_53 : f32 to vector<16x128xf32>
    %124 = arith.divf %123, %122 : vector<16x128xf32>
    %cst_54 = arith.constant 4.000000e+00 : f32
    %125 = vector.broadcast %cst_54 : f32 to vector<16x128xf32>
    %126 = arith.mulf %124, %125 : vector<16x128xf32>
    %cst_55 = arith.constant 0.000000e+00 : f32
    %127 = vector.broadcast %cst_55 : f32 to vector<16x128xf32>
    %128 = arith.select %117, %126, %127 : vector<16x128xi1>, vector<16x128xf32>
    %cst_56 = arith.constant 1.250000e-01 : f32
    %129 = vector.broadcast %cst_56 : f32 to vector<16x128xf32>
    %130 = arith.mulf %78, %129 : vector<16x128xf32>
    %131 = arith.addf %112, %128 : vector<16x128xf32>
    %132 = arith.select %10, %131, %31 : vector<16x128xi1>, vector<16x128xf32>
    %133 = arith.select %8, %130, %132 : vector<16x128xi1>, vector<16x128xf32>
    %134 = arith.select %6, %38, %133 : vector<16x128xi1>, vector<16x128xf32>
    %c0_57 = arith.constant 0 : index
    %c0_58 = arith.constant 0 : index
    %135 = vector.load %arg3[%c0_57, %c0_58] : memref<16x128xf32, #tpu.memory_space<vmem>>, vector<16x128xf32>
    tpu.vector_store %arg3[%c0_57, %c0_58], %134 {strides = array<i32>} : memref<16x128xf32, #tpu.memory_space<vmem>>, vector<16x128xf32>,
    return
  }
}

</mosaic_0001>

<bundles_post_ra>
// kernel: mgcvae_forward_dense.1
= control target key start
LH: loop header
LB: loop body
LE: loop exit
PB: predicated region body
PF: predicated region fallthrough
CT: control target
= control target key end

     0   :  { %8 = vsyncpa [#allocation3], 0  ;;  %s1048_s15 = smov [#allocation2]   ;;  %s1049_s17 = smov 64   ;;  %s1271_s0 = inlined_call_operand.vmem [shape: f32[32,128], index: 0, kind: input, shape index: {}]   ;;  %s1272_s1 = inlined_call_operand.hbm [shape: bf16[640,128], index: 1, kind: input, shape index: {}]   ;;  %s1273_s2 = inlined_call_operand.vmem [shape: f32[8,128], index: 2, kind: input, shape index: {}]   ;;  %s1274_s3 = inlined_call_operand.vmem [shape: f32[16,128], index: 3, kind: output, shape index: {}]  }
   0x1   :  { %s15_s14 = sshll.u32 %s1272_s1, 4  ;;  %s17_s16 = sshll.u32 %s1048_s15, 4  ;;  %s16_s14 = int_to_ptr.hbm [resolvable:$true] %s15_s14  ;;  %s18_s16 = int_to_ptr.vmem [resolvable:$true] %s17_s16 }
   0x2   :  { %s1050_s18 = smov 4  }
   0x3   :  { %23 = dma.hbm_to_vmem [thread:$0]  %s16_s14, 5120, %s18_s16, [#allocation3], %s1049_s17, %s1049_s17, %s1050_s18  }
   0x4   :  { %1046 = dma.done.wait [#allocation3], 5120  }
   0x5   :  { %1047 = vsyncadd [#allocation3], 4294962176  ;;  %v948_v0 = vld [vmem:[#allocation2 + $0x38] sm:$0xff]  ;;  %v947_v1 = vld [vmem:[#allocation2 + $0x30] sm:$0xff]  ;;  %vm119_vm0 = vcmask 130048   ;;  %v34_v23 = vlaneseq  ;;  %s1051_s4 = smov 8  }
   0x6   :  { %105 = vmatpush.bf16.msra.mxu0 %v948_v0  ;;  %v946_v2 = vld [vmem:[#allocation2 + $0x28] sm:$0xff]  ;;  %v945_v3 = vld [vmem:[#allocation2 + $0x20] sm:$0xff]  ;;  %v944_v4 = vld [vmem:[#allocation2 + $0x18] sm:$0xff]  ;;  %s1052_s5 = smov 112   ;;  %vm399_vm2 = vcmask 64512  }
   0x7   :  { %v943_v5 = vld [vmem:[#allocation2 + $0x10] sm:$0xff]  ;;  %v942_v6 = vld [vmem:[#allocation2 + $0x8] sm:$0xff]  ;;  %v941_v7 = vld [vmem:[#allocation2] sm:$0xff]  ;;  %v1102_v24 = vand.u32 127, %v34_v23 }
   0x8   :  { %v1079_v8 = vld [vmem:[%s1271_s0] sm:$0xff]  ;;  %v1084_v9 = vld [vmem:[%s1271_s0 + $0x8] sm:$0xff]  ;;  %v956_v11 = vld [vmem:[#allocation2 + $0x78] sm:$0xff] }
   0x9   :  { %v40_v10 = vpack.c.bf16 %v1084_v9, %v1079_v8  ;;  %222 = vmatpush.bf16.msra.mxu2 %v956_v11  ;;  %v955_v12 = vld [vmem:[#allocation2 + $0x70] sm:$0xff]  ;;  %v954_v13 = vld [vmem:[#allocation2 + $0x68] sm:$0xff]  ;;  %v953_v14 = vld [vmem:[#allocation2 + $0x60] sm:$0xff]  ;;  %vm38_vm1 = vcmp.lt.s32.totalorder %v1102_v24, 32  ;;  %vm36_vm3 = vcmp.lt.s32.totalorder %v1102_v24, 8  ;;  %vm661_vm12 = vcmp.ge.s32.totalorder %v1102_v24, 32 }
   0xa   :  { %106 = vmatpush.bf16.msra.mxu0 %v947_v1  ;;  %v1091_v17 = vld [vmem:[%s1271_s0 + $0x10] sm:$0xff]  ;;  %v1098_v18 = vld [vmem:[%s1271_s0 + $0x18] sm:$0xff]  ;;  %v950_v21 = vld [vmem:[#allocation2 + $0x48] sm:$0xff]  ;;  %vm662_vm13 = vcmp.lt.s32.totalorder %v1102_v24, 40 }
   0xb   :  { %v952_v19 = vld [vmem:[#allocation2 + $0x58] sm:$0xff]  ;;  %v951_v20 = vld [vmem:[#allocation2 + $0x50] sm:$0xff]  ;;  %v949_v22 = vld [vmem:[#allocation2 + $0x40] sm:$0xff] }
   0xc   :  { %v986_v26 = vld [vmem:[%s1273_s2] ss:$0 sm:$0xff]  ;;  %v1112_v35 = vld [vmem:[#allocation2 + $0xb8] sm:$0xff]  ;;  %v1115_v36 = vld [vmem:[#allocation2 + $0xb0] sm:$0xff] }
   0xd   :  { %223 = vmatpush.bf16.msra.mxu2 %v955_v12  ;;  %v1118_v37 = vld [vmem:[#allocation2 + $0xa8] sm:$0xff]  ;;  %v1121_v38 = vld [vmem:[#allocation2 + $0xa0] sm:$0xff]  ;;  %v1128_v41 = vld [vmem:[#allocation2 + $0x98] sm:$0xff] }
   0xe   :  { %107 = vmatpush.bf16.msra.mxu0 %v946_v2  ;;  %v1131_v42 = vld [vmem:[#allocation2 + $0x90] sm:$0xff]  ;;  %v1134_v43 = vld [vmem:[#allocation2 + $0x88] sm:$0xff]  ;;  %v1137_v44 = vld [vmem:[#allocation2 + $0x80] sm:$0xff] }
   0xf   :  { %v987_v46 = vld [vmem:[%s1273_s2 + $0x1] ss:$0 sm:$0xff]  ;;  %v988_v59 = vld [vmem:[%s1273_s2 + $0x2] ss:$0 sm:$0xff]  ;;  %v968_v12 = vld [vmem:[#allocation2 + $0xd8] sm:$0xff] }
  0x10   :  { %v969_v11 = vld [vmem:[#allocation2 + $0xe0] sm:$0xff]  ;;  %vm1208_vm14 = vmand %vm661_vm12, %vm662_vm13 }
  0x11   :  { %224 = vmatpush.bf16.msra.mxu2 %v954_v13 }
  0x12   :  { %108 = vmatpush.bf16.msra.mxu0 %v945_v3 }
  0x15   :  { %225 = vmatpush.bf16.msra.mxu2 %v953_v14 }
  0x16   :  { %109 = vmatpush.bf16.msra.mxu0 %v944_v4 }
  0x19   :  { %226 = vmatpush.bf16.msra.mxu2 %v952_v19  ;;  %v965_v19 = vld [vmem:[#allocation2 + $0xc0] sm:$0xff] }
  0x1a   :  { %110 = vmatpush.bf16.msra.mxu0 %v943_v5 }
  0x1d   :  { %227 = vmatpush.bf16.msra.mxu2 %v951_v20  ;;  %v980_v20 = vld [vmem:[#allocation2 + $0x138] sm:$0xff] }
  0x1e   :  { %111 = vmatpush.bf16.msra.mxu0 %v942_v6  ;;  %v972_v6 = vld [vmem:[#allocation2 + $0xf8] sm:$0xff] }
  0x21   :  { %228 = vmatpush.bf16.msra.mxu2 %v950_v21  ;;  %v977_v21 = vld [vmem:[#allocation2 + $0x120] sm:$0xff] }
  0x22   :  { %112 = vmatpush.bf16.msra.mxu0 %v941_v7  ;;  %v971_v7 = vld [vmem:[#allocation2 + $0xf0] sm:$0xff] }
  0x25   :  { %113 = vmatmul.bf16.vlgmr.msra.gmra.mxu0 %v40_v10  ;;  %229 = vmatpush.bf16.msra.mxu2 %v949_v22  ;;  %v970_v10 = vld [vmem:[#allocation2 + $0xe8] sm:$0xff] }
  0x29   :  { %573 = vmatpush.bf16.msrb.mxu2 %v980_v20 }
  0xa2   :  { %v114_v15 = vpop.f32.mrf.mxu0 }
  0xaa   :  { %v116_v16 = vpop.f32.mrf.mxu0 }
  0xab   :  { %140 = vmatpush.msra.mxu1 %v116_v16 }
  0xad   :  { %141 = vmatpush.msra.mxu1 %v114_v15 }
  0xae   :  { %807 = vmatmul.msk.f32.vlgmr.msra.gmra.mxu1 %vm119_vm0, %v1091_v17 }
  0xaf   :  { %334 = vmatpush.bf16.msrb.mxu1 %v1112_v35 }
  0xb3   :  { %335 = vmatpush.bf16.msrb.mxu1 %v1115_v36 }
  0xb6   :  { %808 = vmatmul.msk.f32.gmra.mxu1 %vm119_vm0, %v1098_v18 }
  0xb7   :  { %336 = vmatpush.bf16.msrb.mxu1 %v1118_v37 }
  0xbb   :  { %337 = vmatpush.bf16.msrb.mxu1 %v1121_v38 }
  0xbf   :  { %338 = vmatpush.bf16.msrb.mxu1 %v1128_v41 }
  0xc3   :  { %339 = vmatpush.bf16.msrb.mxu1 %v1131_v42 }
  0xc7   :  { %340 = vmatpush.bf16.msrb.mxu1 %v1134_v43 }
  0xcb   :  { %341 = vmatpush.bf16.msrb.mxu1 %v1137_v44 }
  0xcf   :  { %628 = vmatpush.bf16.msra.mxu1 %v972_v6 }
  0xd3   :  { %629 = vmatpush.bf16.msra.mxu1 %v971_v7 }
  0xd7   :  { %630 = vmatpush.bf16.msra.mxu1 %v970_v10 }
  0xdb   :  { %631 = vmatpush.bf16.msra.mxu1 %v969_v11 }
  0xdf   :  { %632 = vmatpush.bf16.msra.mxu1 %v968_v12 }
 0x12b   :  { %v143_v25 = vpop.f32.mrf.mxu1 }
 0x12c   :  { %v149_v27 = vsel %vm38_vm1, %v143_v25, %v114_v15 }
 0x12d   :  { %v153_v28 = vadd.f32 %v986_v26, %v149_v27 }
 0x12f   :  { %v155_v32 = vmax.f32 %v153_v28, 0.0 }
 0x133   :  { %v146_v29 = vpop.f32.mrf.mxu1 }
 0x134   :  { %v150_v30 = vsel %vm38_vm1, %v146_v29, %v116_v16 }
 0x135   :  { %v154_v31 = vadd.f32 %v986_v26, %v150_v30 }
 0x137   :  { %v156_v33 = vmax.f32 %v154_v31, 0.0 }
 0x139   :  { %v157_v34 = vpack.c.bf16 %v156_v33, %v155_v32  ;;  %v976_v32 = vld [vmem:[#allocation2 + $0x118] sm:$0xff]  ;;  %v975_v33 = vld [vmem:[#allocation2 + $0x110] sm:$0xff] }
 0x13b   :  { %230 = vmatmul.bf16.vlgmr.msra.gmra.mxu2 %v157_v34  ;;  %v974_v34 = vld [vmem:[#allocation2 + $0x108] sm:$0xff] }
 0x1be   :  { %v231_v39 = vpop.f32.mrf.mxu2 }
 0x1c6   :  { %v233_v40 = vpop.f32.mrf.mxu2 }
 0x1c7   :  { %250 = vmatpush.msrb.mxu0 %v233_v40 }
 0x1c9   :  { %251 = vmatpush.msrb.mxu0 %v231_v39 }
 0x1ca   :  { %841 = vmatmul.msk.f32.vlgmr.msrb.gmra.mxu0 %vm119_vm0, %v1091_v17 }
 0x1cb   :  { %554 = vmatpush.bf16.msra.mxu0 %v980_v20 }
 0x1d2   :  { %842 = vmatmul.msk.f32.gmra.mxu0 %vm119_vm0, %v1098_v18 }
 0x247   :  { %v253_v45 = vpop.f32.mrf.mxu0 }
 0x248   :  { %v259_v47 = vsel %vm38_vm1, %v253_v45, %v231_v39  ;;  %v990_v45 = vld [vmem:[%s1273_s2 + $0x4] ss:$0 sm:$0xff] }
 0x249   :  { %v263_v48 = vadd.f32 %v987_v46, %v259_v47 }
 0x24b   :  { %v265_v51 = vmax.f32 %v263_v48, 0.0 }
 0x24d   :  { %v1149_v54 = vsel %vm38_vm1, %v265_v51, %v263_v48 }
 0x24f   :  { %v256_v49 = vpop.f32.mrf.mxu0 }
 0x250   :  { %v260_v50 = vsel %vm38_vm1, %v256_v49, %v233_v40 }
 0x251   :  { %v264_v52 = vadd.f32 %v987_v46, %v260_v50 }
 0x253   :  { %v266_v53 = vmax.f32 %v264_v52, 0.0 }
 0x255   :  { %v1153_v55 = vsel %vm38_vm1, %v266_v53, %v264_v52  ;;  %v991_v52 = vld [vmem:[%s1273_s2 + $0x5] ss:$0 sm:$0xff] }
 0x256   :  { %v269_v56 = vpack.c.bf16 %v1153_v55, %v1149_v54 }
 0x258   :  { %342 = vmatmul.bf16.vlgmr.msrb.gmra.mxu1 %v269_v56 }
 0x2d5   :  { %v343_v57 = vpop.f32.mrf.mxu1 }
 0x2dd   :  { %v345_v58 = vpop.f32.mrf.mxu1 }
 0x2de   :  { %364 = vmatpush.msra.mxu3 %v345_v58 }
 0x2e0   :  { %365 = vmatpush.msra.mxu3 %v343_v57 }
 0x2e1   :  { %875 = vmatmul.msk.f32.vlgmr.msra.gmra.mxu3 %vm119_vm0, %v1091_v17  ;;  %v967_v17 = vld [vmem:[#allocation2 + $0xd0] sm:$0xff] }
 0x2e2   :  { %471 = vmatpush.bf16.msrb.mxu3 %v972_v6  ;;  %633 = vmatpush.bf16.msra.mxu1 %v967_v17 }
 0x2e6   :  { %472 = vmatpush.bf16.msrb.mxu3 %v971_v7 }
 0x2e9   :  { %876 = vmatmul.msk.f32.gmra.mxu3 %vm119_vm0, %v1098_v18  ;;  %v966_v18 = vld [vmem:[#allocation2 + $0xc8] sm:$0xff] }
 0x2ea   :  { %473 = vmatpush.bf16.msrb.mxu3 %v970_v10  ;;  %634 = vmatpush.bf16.msra.mxu1 %v966_v18 }
 0x2ee   :  { %474 = vmatpush.bf16.msrb.mxu3 %v969_v11  ;;  %635 = vmatpush.bf16.msra.mxu1 %v965_v19 }
 0x2f2   :  { %475 = vmatpush.bf16.msrb.mxu3 %v968_v12 }
 0x2f6   :  { %476 = vmatpush.bf16.msrb.mxu3 %v967_v17 }
 0x2fa   :  { %477 = vmatpush.bf16.msrb.mxu3 %v966_v18 }
 0x2fe   :  { %478 = vmatpush.bf16.msrb.mxu3 %v965_v19 }
 0x302   :  { %647 = vmatpush.bf16.msra.mxu3 %v1112_v35  ;;  %v973_v35 = vld [vmem:[#allocation2 + $0x100] sm:$0xff] }
 0x306   :  { %648 = vmatpush.bf16.msra.mxu3 %v1115_v36 }
 0x30a   :  { %649 = vmatpush.bf16.msra.mxu3 %v1118_v37  ;;  %v989_v37 = vld [vmem:[%s1273_s2 + $0x3] ss:$0 sm:$0xff] }
 0x30e   :  { %650 = vmatpush.bf16.msra.mxu3 %v1121_v38 }
 0x312   :  { %651 = vmatpush.bf16.msra.mxu3 %v1128_v41 }
 0x316   :  { %652 = vmatpush.bf16.msra.mxu3 %v1131_v42 }
 0x31a   :  { %653 = vmatpush.bf16.msra.mxu3 %v1134_v43 }
 0x31e   :  { %654 = vmatpush.bf16.msra.mxu3 %v1137_v44 }
 0x364   :  { %v367_v60 = vpop.f32.mrf.mxu3 }
 0x365   :  { %v1164_v61 = vadd.f32 %v988_v59, %v367_v60 }
 0x367   :  { %v373_v62 = vmul.f32 0.5, %v1164_v61 }
 0x369   :  { %v375_v63 = vmul.f32 1.442695, %v373_v62 }
 0x36b   :  { %994 = vpow2.f32 %v375_v63 }
 0x36c   :  { %v370_v0 = vpop.f32.mrf.mxu3 }
 0x36d   :  { %v1167_v1 = vadd.f32 %v988_v59, %v370_v0 }
 0x36f   :  { %v374_v2 = vmul.f32 0.5, %v1167_v1 }
 0x371   :  { %v995_v3 = vpop.eup %994  ;;  %v377_v4 = vmul.f32 1.442695, %v374_v2 }
 0x372   :  { %381 = vrot.lane.b32.xlu0 %v995_v3, %s1051_s4 }
 0x373   :  { %996 = vpow2.f32 %v377_v4 }
 0x379   :  { %v997_v5 = vpop.eup %996 }
 0x37a   :  { %383 = vrot.lane.b32.xlu0 %v997_v5, %s1051_s4 }
 0x3e4   :  { %v382_v13 = vpop.permute.xlu0 %381 }
 0x3e5   :  { %v387_v14 = vmul.f32 %v382_v13, %v1079_v8  ;;  %v979_v8 = vld [vmem:[#allocation2 + $0x130] sm:$0xff] }
 0x3e6   :  { %555 = vmatpush.bf16.msra.mxu0 %v979_v8  ;;  %574 = vmatpush.bf16.msrb.mxu2 %v979_v8 }
 0x3e7   :  { %391 = vrot.lane.b32.xlu1 %v387_v14, %s1052_s5 }
 0x3ec   :  { %v384_v15 = vpop.permute.xlu0 %383 }
 0x3ed   :  { %v388_v16 = vmul.f32 %v384_v15, %v1084_v9  ;;  %v978_v9 = vld [vmem:[#allocation2 + $0x128] sm:$0xff] }
 0x3ee   :  { %556 = vmatpush.bf16.msra.mxu0 %v978_v9  ;;  %575 = vmatpush.bf16.msrb.mxu2 %v978_v9 }
 0x3ef   :  { %393 = vrot.lane.b32.xlu1 %v388_v16, %s1052_s5 }
 0x3f2   :  { %557 = vmatpush.bf16.msra.mxu0 %v977_v21  ;;  %576 = vmatpush.bf16.msrb.mxu2 %v977_v21 }
 0x3f6   :  { %558 = vmatpush.bf16.msra.mxu0 %v976_v32  ;;  %577 = vmatpush.bf16.msrb.mxu2 %v976_v32 }
 0x3fa   :  { %559 = vmatpush.bf16.msra.mxu0 %v975_v33  ;;  %578 = vmatpush.bf16.msrb.mxu2 %v975_v33 }
 0x3fe   :  { %560 = vmatpush.bf16.msra.mxu0 %v974_v34  ;;  %579 = vmatpush.bf16.msrb.mxu2 %v974_v34 }
 0x402   :  { %561 = vmatpush.bf16.msra.mxu0 %v973_v35  ;;  %580 = vmatpush.bf16.msrb.mxu2 %v973_v35  ;;  %v993_v35 = vld [vmem:[%s1273_s2 + $0x7] ss:$0 sm:$0xff] }
 0x459   :  { %v392_v22 = vpop.permute.xlu1 %391 }
 0x45a   :  { %v397_v23 = vadd.f32 %v392_v22, %v1164_v61 }
 0x45c   :  { %v400_v26 = vsel %vm399_vm2, %v397_v23, 0.0 }
 0x45d   :  { %v402_v29 = vsel %vm36_vm3, %v400_v26, %v1149_v54 }
 0x461   :  { %v394_v25 = vpop.permute.xlu1 %393 }
 0x462   :  { %v398_v27 = vadd.f32 %v394_v25, %v1167_v1 }
 0x464   :  { %v401_v28 = vsel %vm399_vm2, %v398_v27, 0.0 }
 0x465   :  { %v403_v30 = vsel %vm36_vm3, %v401_v28, %v1153_v55  ;;  %v992_v28 = vld [vmem:[%s1273_s2 + $0x6] ss:$0 sm:$0xff] }
 0x466   :  { %v404_v31 = vpack.c.bf16 %v403_v30, %v402_v29 }
 0x468   :  { %479 = vmatmul.bf16.vlgmr.msrb.gmra.mxu3 %v404_v31 }
 0x4eb   :  { %v480_v36 = vpop.f32.mrf.mxu3 }
 0x4ec   :  { %v481_v38 = vadd.f32 %v989_v37, %v480_v36 }
 0x4ee   :  { %v485_v41 = vmax.f32 %v481_v38, 0.0 }
 0x4f3   :  { %v482_v39 = vpop.f32.mrf.mxu3 }
 0x4f4   :  { %v483_v40 = vadd.f32 %v989_v37, %v482_v39 }
 0x4f6   :  { %v486_v42 = vmax.f32 %v483_v40, 0.0 }
 0x4f8   :  { %v487_v43 = vpack.c.bf16 %v486_v42, %v485_v41 }
 0x4fa   :  { %562 = vmatmul.bf16.vlgmr.msra.gmra.mxu0 %v487_v43 }
 0x577   :  { %v563_v44 = vpop.f32.mrf.mxu0 }
 0x578   :  { %v564_v46 = vadd.f32 %v990_v45, %v563_v44 }
 0x57a   :  { %v568_v49 = vmax.f32 %v564_v46, 0.0 }
 0x57f   :  { %v565_v47 = vpop.f32.mrf.mxu0 }
 0x580   :  { %v566_v48 = vadd.f32 %v990_v45, %v565_v47 }
 0x582   :  { %v569_v50 = vmax.f32 %v566_v48, 0.0 }
 0x584   :  { %v570_v51 = vpack.c.bf16 %v569_v50, %v568_v49 }
 0x586   :  { %581 = vmatmul.bf16.vlgmr.msrb.gmra.mxu2 %v570_v51 }
 0x609   :  { %v582_v53 = vpop.f32.mrf.mxu2 }
 0x60a   :  { %v583_v56 = vadd.f32 %v991_v52, %v582_v53 }
 0x60c   :  { %v587_v57 = vsub.f32 0.0, %v583_v56 }
 0x60e   :  { %v589_v58 = vmul.f32 1.442695, %v587_v57 }
 0x610   :  { %998 = vpow2.f32 %v589_v58 }
 0x611   :  { %v584_v59 = vpop.f32.mrf.mxu2 }
 0x612   :  { %v585_v60 = vadd.f32 %v991_v52, %v584_v59 }
 0x614   :  { %v588_v62 = vsub.f32 0.0, %v585_v60 }
 0x616   :  { %v999_v63 = vpop.eup %998  ;;  %v591_v0 = vmul.f32 1.442695, %v588_v62 }
 0x617   :  { %v593_v2 = vadd.f32 1.0, %v999_v63 }
 0x618   :  { %1000 = vpow2.f32 %v591_v0 }
 0x619   :  { %1002 = vrcp.f32 %v593_v2  ;;  %vm600_vm5 = vweird.f32 %v593_v2  ;;  %v606_v15 = vand.u32 2147483648, %v593_v2  ;;  %v604_v17 = vand.u32 2147483647, %v593_v2 }
 0x61b   :  { %v607_v9 = vor.u32 1.1754944e-38, %v606_v15  ;;  %vm605_vm10 = vcmp.eq.f32.partialorder %v604_v17, 8.507059e+37 }
 0x61e   :  { %v1001_v3 = vpop.eup %1000 }
 0x61f   :  { %v1003_v4 = vpop.eup %1002  ;;  %v594_v5 = vadd.f32 1.0, %v1001_v3 }
 0x620   :  { %v596_v6 = vmul.f32 %v1003_v4, %v593_v2  ;;  %vm601_vm4 = vweird.f32 %v1003_v4 }
 0x621   :  { %1004 = vrcp.f32 %v594_v5  ;;  %v621_v16 = vand.u32 2147483648, %v594_v5  ;;  %v619_v19 = vand.u32 2147483647, %v594_v5  ;;  %vm602_vm7 = vmor %vm600_vm5, %vm601_vm4  ;;  %vm615_vm8 = vweird.f32 %v594_v5 }
 0x622   :  { %v597_v7 = vsub.f32 1.0, %v596_v6 }
 0x623   :  { %v622_v21 = vor.u32 1.1754944e-38, %v621_v16  ;;  %vm620_vm11 = vcmp.eq.f32.partialorder %v619_v19, 8.507059e+37 }
 0x624   :  { %v598_v10 = vmul.f32 %v1003_v4, %v597_v7 }
 0x626   :  { %v599_v14 = vadd.f32 %v1003_v4, %v598_v10 }
 0x627   :  { %v1005_v11 = vpop.eup %1004 }
 0x628   :  { %v611_v12 = vmul.f32 %v1005_v11, %v594_v5  ;;  %vm616_vm6 = vweird.f32 %v1005_v11  ;;  %v603_v20 = vsel %vm602_vm7, %v1003_v4, %v599_v14  ;;  %vm714_vm7 = vcmp.ge.s32.totalorder %v1102_v24, 40 }
 0x629   :  { %vm617_vm9 = vmor %vm615_vm8, %vm616_vm6  ;;  %v1194_v23 = vsel %vm605_vm10, %v607_v9, %v603_v20  ;;  %vm39_vm6 = vcmp.lt.s32.totalorder %v1102_v24, 44 }
 0x62a   :  { %v612_v13 = vsub.f32 1.0, %v611_v12  ;;  %vm1234_vm12 = vmand %vm714_vm7, %vm39_vm6 }
 0x62c   :  { %v613_v18 = vmul.f32 %v1005_v11, %v612_v13 }
 0x62e   :  { %v614_v8 = vadd.f32 %v1005_v11, %v613_v18 }
 0x630   :  { %v618_v22 = vsel %vm617_vm9, %v1005_v11, %v614_v8 }
 0x631   :  { %v1196_v25 = vsel %vm620_vm11, %v622_v21, %v618_v22 }
 0x632   :  { %v625_v26 = vpack.c.bf16 %v1196_v25, %v1194_v23 }
 0x634   :  { %636 = vmatmul.bf16.vlgmr.msra.gmra.mxu1 %v625_v26 }
 0x6b1   :  { %v637_v27 = vpop.f32.mrf.mxu1 }
 0x6b2   :  { %v638_v29 = vadd.f32 %v992_v28, %v637_v27 }
 0x6b4   :  { %v642_v32 = vmax.f32 %v638_v29, 0.0 }
 0x6b9   :  { %v639_v30 = vpop.f32.mrf.mxu1 }
 0x6ba   :  { %v640_v31 = vadd.f32 %v992_v28, %v639_v30 }
 0x6bc   :  { %v643_v33 = vmax.f32 %v640_v31, 0.0 }
 0x6be   :  { %v644_v34 = vpack.c.bf16 %v643_v33, %v642_v32 }
 0x6c0   :  { %655 = vmatmul.bf16.vlgmr.msra.gmra.mxu3 %v644_v34 }
 0x743   :  { %v656_v36 = vpop.f32.mrf.mxu3 }
 0x744   :  { %v657_v38 = vadd.f32 %v993_v35, %v656_v36 }
 0x746   :  { %v664_v39 = vsel %vm1208_vm14, %v657_v38, -inf  ;;  %v716_v57 = vsub.f32 0.0, %v657_v38 }
 0x747   :  { %666 = vmax.xlane.f32.xlu2 %v664_v39 }
 0x748   :  { %v718_v58 = vmul.f32 1.442695, %v716_v57 }
 0x74b   :  { %v658_v40 = vpop.f32.mrf.mxu3 }
 0x74c   :  { %v659_v41 = vadd.f32 %v993_v35, %v658_v40 }
 0x74e   :  { %v665_v42 = vsel %vm1208_vm14, %v659_v41, -inf  ;;  %v717_v59 = vsub.f32 0.0, %v659_v41 }
 0x74f   :  { %668 = vmax.xlane.f32.xlu2 %v665_v42 }
 0x750   :  { %v720_v60 = vmul.f32 1.442695, %v717_v59 }
 0x7ba   :  { %v667_v43 = vpop.xlane.xlu2 %666 }
 0x7bb   :  { %v670_v44 = vsub.f32 %v657_v38, %v667_v43 }
 0x7bd   :  { %v672_v45 = vmin.f32 %v670_v44, 0.0 }
 0x7bf   :  { %v674_v46 = vmul.f32 1.442695, %v672_v45 }
 0x7c1   :  { %1006 = vpow2.f32 %v674_v46 }
 0x7c2   :  { %v669_v47 = vpop.xlane.xlu2 %668 }
 0x7c3   :  { %v671_v48 = vsub.f32 %v659_v41, %v669_v47 }
 0x7c5   :  { %v673_v49 = vmin.f32 %v671_v48, 0.0 }
 0x7c7   :  { %v1007_v50 = vpop.eup %1006  ;;  %v676_v51 = vmul.f32 1.442695, %v673_v49 }
 0x7c8   :  { %v1218_v52 = vsel %vm1208_vm14, %v1007_v50, 0.0  ;;  %v758_v50 = vmul.f32 0.125, %v1194_v23 }
 0x7c9   :  { %1008 = vpow2.f32 %v676_v51  ;;  %680 = vadd.xlane.f32.xlu0 %v1218_v52 }
 0x7ca   :  { %1010 = vpow2.f32 %v718_v58 }
 0x7cb   :  { %1012 = vpow2.f32 %v720_v60 }
 0x7cf   :  { %v1009_v53 = vpop.eup %1008 }
 0x7d0   :  { %v1223_v56 = vsel %vm1208_vm14, %v1009_v53, 0.0  ;;  %v1011_v62 = vpop.eup %1010 }
 0x7d1   :  { %682 = vadd.xlane.f32.xlu1 %v1223_v56  ;;  %v722_v63 = vadd.f32 1.0, %v1011_v62  ;;  %v1013_v0 = vpop.eup %1012 }
 0x7d2   :  { %v723_v2 = vadd.f32 1.0, %v1013_v0  ;;  %v759_v0 = vmul.f32 0.125, %v1196_v25 }
 0x7d3   :  { %1014 = vrcp.f32 %v722_v63  ;;  %v735_v14 = vand.u32 2147483648, %v722_v63  ;;  %vm729_vm0 = vweird.f32 %v722_v63  ;;  %v733_v15 = vand.u32 2147483647, %v722_v63 }
 0x7d4   :  { %1016 = vrcp.f32 %v723_v2  ;;  %vm744_vm8 = vweird.f32 %v723_v2  ;;  %v750_v29 = vand.u32 2147483648, %v723_v2  ;;  %v748_v32 = vand.u32 2147483647, %v723_v2 }
 0x7d5   :  { %v736_v8 = vor.u32 1.1754944e-38, %v735_v14  ;;  %vm734_vm3 = vcmp.eq.f32.partialorder %v733_v15, 8.507059e+37 }
 0x7d6   :  { %v751_v41 = vor.u32 1.1754944e-38, %v750_v29  ;;  %vm749_vm14 = vcmp.eq.f32.partialorder %v748_v32, 8.507059e+37 }
 0x7d9   :  { %v1015_v3 = vpop.eup %1014 }
 0x7da   :  { %v725_v4 = vmul.f32 %v1015_v3, %v722_v63  ;;  %v1017_v6 = vpop.eup %1016  ;;  %vm730_vm15 = vweird.f32 %v1015_v3 }
 0x7db   :  { %v740_v10 = vmul.f32 %v1017_v6, %v723_v2  ;;  %vm731_vm2 = vmor %vm729_vm0, %vm730_vm15  ;;  %vm745_vm4 = vweird.f32 %v1017_v6  ;;  %vm37_vm0 = vcmp.lt.s32.totalorder %v1102_v24, 16 }
 0x7dc   :  { %v726_v5 = vsub.f32 1.0, %v725_v4  ;;  %vm1228_vm10 = vmor %vm744_vm8, %vm745_vm4 }
 0x7dd   :  { %v741_v12 = vsub.f32 1.0, %v740_v10 }
 0x7de   :  { %v727_v7 = vmul.f32 %v1015_v3, %v726_v5 }
 0x7df   :  { %v742_v17 = vmul.f32 %v1017_v6, %v741_v12 }
 0x7e0   :  { %v728_v13 = vadd.f32 %v1015_v3, %v727_v7 }
 0x7e1   :  { %v743_v28 = vadd.f32 %v1017_v6, %v742_v17 }
 0x7e2   :  { %v732_v18 = vsel %vm731_vm2, %v1015_v3, %v728_v13 }
 0x7e3   :  { %v737_v21 = vsel %vm734_vm3, %v736_v8, %v732_v18  ;;  %v747_v38 = vsel %vm1228_vm10, %v1017_v6, %v743_v28 }
 0x7e4   :  { %v754_v34 = vmul.f32 4.0, %v737_v21  ;;  %v752_v45 = vsel %vm749_vm14, %v751_v41, %v747_v38 }
 0x7e5   :  { %v755_v57 = vmul.f32 4.0, %v752_v45 }
 0x7e6   :  { %v756_v44 = vsel %vm1234_vm12, %v754_v34, 0.0 }
 0x7e7   :  { %v757_v62 = vsel %vm1234_vm12, %v755_v57, 0.0 }
 0x83c   :  { %v681_v11 = vpop.xlane.xlu0 %680 }
 0x83d   :  { %1018 = vrcp.f32 %v681_v11  ;;  %v695_v22 = vand.u32 2147483648, %v681_v11  ;;  %v693_v27 = vand.u32 2147483647, %v681_v11  ;;  %vm689_vm9 = vweird.f32 %v681_v11 }
 0x83f   :  { %v696_v35 = vor.u32 1.1754944e-38, %v695_v22  ;;  %vm694_vm13 = vcmp.eq.f32.partialorder %v693_v27, 8.507059e+37 }
 0x843   :  { %v1019_v16 = vpop.eup %1018 }
 0x844   :  { %v685_v19 = vmul.f32 %v1019_v16, %v681_v11  ;;  %v683_v20 = vpop.xlane.xlu1 %682  ;;  %vm690_vm5 = vweird.f32 %v1019_v16 }
 0x845   :  { %1020 = vrcp.f32 %v683_v20  ;;  %vm691_vm11 = vmor %vm689_vm9, %vm690_vm5  ;;  %v710_v46 = vand.u32 2147483648, %v683_v20  ;;  %v708_v49 = vand.u32 2147483647, %v683_v20  ;;  %vm704_vm2 = vweird.f32 %v683_v20 }
 0x846   :  { %v686_v9 = vsub.f32 1.0, %v685_v19 }
 0x847   :  { %v711_v58 = vor.u32 1.1754944e-38, %v710_v46  ;;  %vm709_vm4 = vcmp.eq.f32.partialorder %v708_v49, 8.507059e+37 }
 0x848   :  { %v687_v26 = vmul.f32 %v1019_v16, %v686_v9 }
 0x84a   :  { %v688_v30 = vadd.f32 %v1019_v16, %v687_v26 }
 0x84b   :  { %v1021_v33 = vpop.eup %1020 }
 0x84c   :  { %v692_v37 = vsel %vm691_vm11, %v1019_v16, %v688_v30  ;;  %v700_v39 = vmul.f32 %v1021_v33, %v683_v20  ;;  %vm705_vm15 = vweird.f32 %v1021_v33 }
 0x84d   :  { %v697_v40 = vsel %vm694_vm13, %v696_v35, %v692_v37  ;;  %vm706_vm3 = vmor %vm704_vm2, %vm705_vm15 }
 0x84e   :  { %v698_v42 = vmul.f32 %v697_v40, %v1218_v52  ;;  %v701_v43 = vsub.f32 1.0, %v700_v39 }
 0x850   :  { %v760_v47 = vadd.f32 %v756_v44, %v698_v42  ;;  %v702_v48 = vmul.f32 %v1021_v33, %v701_v43 }
 0x852   :  { %v762_v51 = vsel %vm39_vm6, %v760_v47, %v1149_v54  ;;  %v703_v52 = vadd.f32 %v1021_v33, %v702_v48 }
 0x853   :  { %v764_v53 = vsel %vm38_vm1, %v758_v50, %v762_v51 }
 0x854   :  { %v766_v59 = vsel %vm37_vm0, %v1164_v61, %v764_v53  ;;  %v707_v60 = vsel %vm706_vm3, %v1021_v33, %v703_v52 }
 0x855   :  { %768 = vst [vmem:[%s1274_s3] sm:$0xff] %v766_v59  ;;  %v712_v23 = vsel %vm709_vm4, %v711_v58, %v707_v60 }
 0x856   :  { %v713_v54 = vmul.f32 %v712_v23, %v1223_v56 }
 0x858   :  { %v761_v63 = vadd.f32 %v757_v62, %v713_v54 }
 0x85a   :  { %v763_v2 = vsel %vm39_vm6, %v761_v63, %v1153_v55 }
 0x85b   :  { %v765_v61 = vsel %vm38_vm1, %v759_v0, %v763_v2 }
 0x85c   :  { %v767_v3 = vsel %vm37_vm0, %v1167_v1, %v765_v61 }
 0x85d   :  { %769 = vst [vmem:[%s1274_s3 + $0x8] sm:$0xff] %v767_v3 }
 0x85e   :  { %774 = vsyncpa [#allocation3], 1 }

</bundles_post_ra>
